<compile_context>
chip_gen: v5e
topology: v5e:2x2
jax: 0.10.0
libtpu: 0.0.40
codegen_flags: <defaults>
</compile_context>

<pallas_src>
import functools

import numpy as np
import jax
import jax.numpy as jnp
from jax.experimental import pallas as pl
from jax.experimental.pallas import tpu as pltpu

LN_EPS = 1e-5
NEG_SLOPE = 0.2
LANES = 128
SUBLANES = 8
BF16_SUBLANES = 16      # bf16 packs 16 rows per vreg


def _round_up(x, m):
    return (x + m - 1) // m * m


def _nearest_idx(in_dim, out_dim):
    # F.interpolate(mode='nearest'): src = floor(dst * in_dim / out_dim)
    idx = np.floor(np.arange(out_dim) * (in_dim / out_dim)).astype(np.int64)
    return np.minimum(idx, in_dim - 1)


def _vmem_budget_bytes():
    """Generation-aware VMEM budget: ~75% of physical per-core VMEM.

    v5e/v6e (128 MiB) -> ~96 MiB, v7x (64 MiB/TC) -> ~48 MiB.  Falls back to
    the v7x-safe 48 MiB if the hardware query is unavailable.
    """
    try:
        phys = int(pltpu.get_tpu_info().vmem_capacity_bytes)
    except Exception:
        phys = 64 * 1024 * 1024
    return (phys * 3) // 4


def _fcres_kernel(x_ref, w1g_ref, w2_ref, w3_ref, ln_ref, o_ref, *, out_dim, out_p):
    inv_d = 1.0 / out_dim

    def layernorm(h, g, b):
        # Padded lanes of h are exactly zero, so full-row sums equal the sums
        # over the real `out_dim` lanes.  One-pass moments (E[h^2]-mu^2) with a
        # non-negative clamp: cancellation can make the difference round
        # slightly negative, which would turn rsqrt into NaN/inf.
        mu = jnp.sum(h, axis=-1, keepdims=True) * inv_d
        ex2 = jnp.sum(h * h, axis=-1, keepdims=True) * inv_d
        var = jnp.maximum(ex2 - mu * mu, 0.0)
        rstd = jax.lax.rsqrt(var + LN_EPS)      # (tile, 1) per-row
        shift_r = -mu * rstd                    # (tile, 1) per-row, ~free
        # gamma/beta are per-lane ROW vectors while mu/rstd are per-row COLUMN
        # vectors, so folding everything into one (tile, out_p) scale/shift
        # would cost an extra per-element mul to materialize it; the
        # 4-op/element row-affine-then-lane-affine form below is already the
        # minimum on a VPU without f32 FMA.
        return (h * rstd + shift_r) * g + b

    def lrelu(h):
        return jnp.maximum(h, NEG_SLOPE * h)    # mul+max (2 VPU slots)

    xb = x_ref[...].astype(jnp.bfloat16)
    ln = ln_ref[...].astype(jnp.float32)

    # Fused first matmul: [W1 | G] packed as one (in_dim, 2*out_p) operand ->
    # a single MXU weight push/drain for the K=in_dim contraction.  The split
    # is at the 128-aligned out_p lane boundary, so no relayout.
    hg = jnp.dot(xb, w1g_ref[...], preferred_element_type=jnp.float32)
    h = hg[:, :out_p]
    res = hg[:, out_p:]   # == x[:, nearest_idx] exactly (0/1 matmul on bf16 x)

    h = lrelu(layernorm(h, ln[0:1, :], ln[1:2, :]))
    h = jnp.dot(h.astype(jnp.bfloat16), w2_ref[...], preferred_element_type=jnp.float32)
    h = lrelu(layernorm(h, ln[2:3, :], ln[3:4, :]))
    h = jnp.dot(h.astype(jnp.bfloat16), w3_ref[...], preferred_element_type=jnp.float32)
    h = layernorm(h, ln[4:5, :], ln[5:6, :])

    o_ref[...] = lrelu(h + res).astype(o_ref.dtype)
    # TODO(synk): dropout(p=0.0) is the identity at inference; no RNG path needed.


def fc_res_block(x, params, *, tile_n=None, out_dtype=None, trim_output=True):
    """x: (N, in_dim) float32. params: dict from init_params (W stored (in,out)).

    out_dtype: pass jnp.bfloat16 to halve HBM writeback / store-slot pressure
      (biggest win on v5e's single vst slot) when the consumer tolerates it.
    trim_output: pass False to receive the padded (n_pad, out_p) layout and
      skip the extra HBM round trip of the slice copy.
    """
    n, in_dim = x.shape
    out_dim = params["w1"].shape[1]
    out_p = _round_up(out_dim, LANES)            # lane-dense feature dim
    out_dtype = x.dtype if out_dtype is None else out_dtype

    # ---- one-time weight packing: zero-pad to out_p lanes, bf16 operands ----
    def pad2(a, r, c):
        return jnp.pad(a, ((0, r - a.shape[0]), (0, c - a.shape[1])))

    # Static nearest-neighbour indices -> 0/1 gather matrix, packed as extra
    # output columns of W1 (bf16-exact), so the residual rides the same matmul.
    idx = _nearest_idx(in_dim, out_dim)
    gmat = np.zeros((in_dim, out_p), np.float32)
    gmat[idx, np.arange(out_dim)] = 1.0
    w1g = jnp.concatenate(
        [pad2(params["w1"], in_dim, out_p), jnp.asarray(gmat)], axis=1
    ).astype(jnp.bfloat16)                                     # (in_dim, 2*out_p)
    w2 = pad2(params["w2"], out_p, out_p).astype(jnp.bfloat16)
    w3 = pad2(params["w3"], out_p, out_p).astype(jnp.bfloat16)

    # LayerNorm affine params packed into one (8, out_p) f32 tile.  Padded
    # lanes get gamma=beta=0 so padded features stay exactly zero end-to-end.
    ln = jnp.zeros((SUBLANES, out_p), jnp.float32)
    for r, name in enumerate(("g1", "b1", "g2", "b2", "g3", "b3")):
        ln = ln.at[r, :out_dim].set(params[name].reshape(-1))

    # ---- generation-aware tile sizing --------------------------------------
    vmem_budget = _vmem_budget_bytes()
    out_bytes = jnp.dtype(out_dtype).itemsize
    # Conservative per-row live VMEM: double-buffered x/out streams plus the
    # f32 intermediates (the fused hg result is 2*out_p wide) in scratch.
    per_row = (2 * in_dim * 4 + 2 * out_p * out_bytes
               + 2 * (2 * out_p) * 4 + 5 * out_p * 4)
    w_bytes = (w1g.size + w2.size + w3.size) * 2 + ln.size * 4
    budget_rows = max(BF16_SUBLANES, (vmem_budget - 2 * w_bytes) // per_row)

    n_rows = _round_up(n, BF16_SUBLANES)
    if tile_n is None:
        tile_n = 1024                              # larger default (v5e/v6e)
    tile_n = int(min(tile_n, budget_rows, n_rows))
    tile_n = max(BF16_SUBLANES, tile_n // BF16_SUBLANES * BF16_SUBLANES)
    # Guarantee >=2 grid steps when the batch permits so v7x's two TensorCores
    # both get work on the "parallel" axis (near-free on 1-TC v5e/v6e).
    if tile_n >= n_rows and n_rows >= 2 * BF16_SUBLANES:
        tile_n = _round_up(n_rows // 2, BF16_SUBLANES)
    n_pad = _round_up(n, tile_n)
    nb = n_pad // tile_n

    # TODO(synk): if the producer can emit x with in_dim pre-padded to a
    # multiple of 128 (zero columns), the x load and the K dim of the fused
    # first matmul become lane-dense for free; not worth an extra copy here.
    xp = x if n_pad == n else jnp.pad(x, ((0, n_pad - n), (0, 0)))

    flops = 2 * n_pad * (in_dim * 2 * out_p + 2 * out_p * out_p)
    bytes_accessed = (xp.size * 4 + n_pad * out_p * out_bytes
                      + (w1g.size + w2.size + w3.size) * 2 + ln.size * 4)

    def build(single_buffer_weights):
        # Resident operands (constant index_map): single-buffer them so Pallas
        # does not allocate 2x VMEM for blocks that never change.
        res_kw = ({"pipeline_mode": pl.Buffered(1)}
                  if single_buffer_weights else {})
        return pl.pallas_call(
            functools.partial(_fcres_kernel, out_dim=out_dim, out_p=out_p),
            out_shape=jax.ShapeDtypeStruct((n_pad, out_p), out_dtype),
            grid=(nb,),
            in_specs=[
                pl.BlockSpec((tile_n, in_dim), lambda i: (i, 0)),             # x (pipelined)
                pl.BlockSpec((in_dim, 2 * out_p), lambda i: (0, 0), **res_kw),  # [W1 | G]
                pl.BlockSpec((out_p, out_p), lambda i: (0, 0), **res_kw),     # W2
                pl.BlockSpec((out_p, out_p), lambda i: (0, 0), **res_kw),     # W3
                pl.BlockSpec((SUBLANES, out_p), lambda i: (0, 0), **res_kw),  # LN g/b
            ],
            out_specs=pl.BlockSpec((tile_n, out_p), lambda i: (i, 0)),
            compiler_params=pltpu.CompilerParams(
                dimension_semantics=("parallel",),     # megacore / 2-TC sharding
                vmem_limit_bytes=int(vmem_budget),
            ),
            cost_estimate=pl.CostEstimate(
                flops=int(flops),
                transcendentals=int(3 * n_pad),
                bytes_accessed=int(bytes_accessed),
            ),
        )

    try:
        # Block here so any unsupported-feature failure surfaces and can
        # trigger the fallback below.
        out = jax.block_until_ready(build(True)(xp, w1g, w2, w3, ln))
    except Exception:
        # pipeline_mode=pl.Buffered(1) rejected by this jax/libtpu combo:
        # fall back to default double-buffered resident weights (same result).
        out = build(False)(xp, w1g, w2, w3, ln)

    if trim_output and (n_pad != n or out_p != out_dim):
        # NOTE: this slice is an extra HBM round trip; consumers that accept
        # the padded (n_pad, out_p) layout should pass trim_output=False.
        out = out[:n, :out_dim]
    return out


def init_params(key, in_dim, out_dim):
    """Deterministic synthetic init. Linear weights stored transposed ((in, out))
    so the kernel computes x @ W directly (== x @ W_pt^T)."""
    k1, k2, k3, k4, k5 = jax.random.split(key, 5)

    def uinit(k, fan_in, shape):
        bound = 1.0 / np.sqrt(fan_in)
        return jax.random.uniform(k, shape, jnp.float32, -bound, bound)

    return {
        "w1": uinit(k1, in_dim, (in_dim, out_dim)),
        "w2": uinit(k2, out_dim, (out_dim, out_dim)),
        "w3": uinit(k3, out_dim, (out_dim, out_dim)),
        # LayerNorm affine params (non-trivial values to exercise the math)
        "g1": 1.0 + 0.1 * jax.random.normal(k4, (out_dim,), jnp.float32),
        "b1": 0.1 * jax.random.normal(k5, (out_dim,), jnp.float32),
        "g2": jnp.ones((out_dim,), jnp.float32),
        "b2": jnp.zeros((out_dim,), jnp.float32),
        "g3": jnp.ones((out_dim,), jnp.float32),
        "b3": jnp.zeros((out_dim,), jnp.float32),
    }


def _reference(x, params):
    """Pure-JAX reference mirroring the PyTorch forward, using the same
    bf16-operand / f32-accumulate matmul precision the kernel uses
    (LayerNorm and activations in f32)."""
    def ln(h, g, b):
        mu = jnp.mean(h, axis=-1, keepdims=True)
        var = jnp.mean((h - mu) ** 2, axis=-1, keepdims=True)
        return (h - mu) / jnp.sqrt(var + LN_EPS) * g + b

    def dot(a, b):
        return jnp.dot(a.astype(jnp.bfloat16), b.astype(jnp.bfloat16),
                       preferred_element_type=jnp.float32)

    lrelu = lambda h: jnp.maximum(h, NEG_SLOPE * h)
    in_dim = x.shape[1]
    out_dim = params["w1"].shape[1]
    h = lrelu(ln(dot(x, params["w1"]), params["g1"], params["b1"]))
    h = lrelu(ln(dot(h, params["w2"]), params["g2"], params["b2"]))
    h = ln(dot(h, params["w3"]), params["g3"], params["b3"])
    idx = _nearest_idx(in_dim, out_dim)
    res = x[:, idx].astype(jnp.bfloat16).astype(jnp.float32)
    return lrelu(h + res)


if __name__ == "__main__":
    N, IN_DIM, OUT_DIM = 8, 16, 32

    key = jax.random.PRNGKey(0)
    kx, kp = jax.random.split(key)
    x = jax.random.normal(kx, (N, IN_DIM), jnp.float32)
    params = init_params(kp, IN_DIM, OUT_DIM)

    out = jax.block_until_ready(fc_res_block(x, params))

    ref = jax.block_until_ready(_reference(x, params))
    np.testing.assert_allclose(np.asarray(out), np.asarray(ref),
                               rtol=1e-3, atol=1e-3)
    print("KERNEL_OK")
</pallas_src>

<mosaic_0001>
module attributes {stable_mosaic.version = 11 : i64} {
  func.func @_fcres_kernel(%arg0: i32, %arg1: memref<16x16xf32, #tpu.memory_space<vmem>>, %arg2: memref<16x256xbf16, #tpu.memory_space<vmem>>, %arg3: memref<128x128xbf16, #tpu.memory_space<vmem>>, %arg4: memref<128x128xbf16, #tpu.memory_space<vmem>>, %arg5: memref<8x128xf32, #tpu.memory_space<vmem>>, %arg6: memref<16x128xf32, #tpu.memory_space<vmem>>) attributes {dimension_semantics = [#tpu.dimension_semantics<parallel>], iteration_bounds = array<i64: 1>, scalar_prefetch = 0 : i64, scratch_operands = 0 : i64, tpu.core_type = #tpu.core_type<tc>, window_params = [{transform_indices = @transform_0, window_bounds = array<i64: 16, 16>}, {pipeline_mode = #tpu.pipeline_mode<synchronous>, transform_indices = @transform_1, window_bounds = array<i64: 16, 256>}, {pipeline_mode = #tpu.pipeline_mode<synchronous>, transform_indices = @transform_2, window_bounds = array<i64: 128, 128>}, {pipeline_mode = #tpu.pipeline_mode<synchronous>, transform_indices = @transform_3, window_bounds = array<i64: 128, 128>}, {pipeline_mode = #tpu.pipeline_mode<synchronous>, transform_indices = @transform_4, window_bounds = array<i64: 8, 128>}, {transform_indices = @transform_5, window_bounds = array<i64: 16, 128>}]} {
    %c0 = arith.constant 0 : index
    %c0_0 = arith.constant 0 : index
    %0 = vector.load %arg1[%c0, %c0_0] : memref<16x16xf32, #tpu.memory_space<vmem>>, vector<16x16xf32>
    %1 = arith.truncf %0 : vector<16x16xf32> to vector<16x16xbf16>
    %c0_1 = arith.constant 0 : index
    %c0_2 = arith.constant 0 : index
    %2 = vector.load %arg5[%c0_1, %c0_2] : memref<8x128xf32, #tpu.memory_space<vmem>>, vector<8x128xf32>
    %c0_3 = arith.constant 0 : index
    %c0_4 = arith.constant 0 : index
    %3 = vector.load %arg2[%c0_3, %c0_4] : memref<16x256xbf16, #tpu.memory_space<vmem>>, vector<16x256xbf16>
    %cst = arith.constant dense<0.000000e+00> : vector<16x256xf32>
    %4 = tpu.matmul %1, %3, %cst {dimension_numbers = #tpu.dot_dimension_numbers<[1], [0], [0], [1], [0, 0, 1, 1], [], []>} : vector<16x16xbf16>, vector<16x256xbf16>, vector<16x256xf32> -> vector<16x256xf32>
    %5 = vector.extract_strided_slice %4 {offsets = [0, 0], sizes = [16, 128], strides = [1, 1]} : vector<16x256xf32> to vector<16x128xf32>
    %6 = vector.extract_strided_slice %4 {offsets = [0, 128], sizes = [16, 128], strides = [1, 1]} : vector<16x256xf32> to vector<16x128xf32>
    %7 = vector.extract_strided_slice %2 {offsets = [0, 0], sizes = [1, 128], strides = [1, 1]} : vector<8x128xf32> to vector<1x128xf32>
    %8 = vector.extract_strided_slice %2 {offsets = [1, 0], sizes = [1, 128], strides = [1, 1]} : vector<8x128xf32> to vector<1x128xf32>
    %cst_5 = arith.constant dense<0.000000e+00> : vector<16xf32>
    %9 = vector.multi_reduction <add>, %5, %cst_5 [1] : vector<16x128xf32> to vector<16xf32>
    %10 = vector.shape_cast %9 : vector<16xf32> to vector<16x1xf32>
    %cst_6 = arith.constant 3.125000e-02 : f32
    %11 = vector.broadcast %cst_6 : f32 to vector<16x1xf32>
    %12 = arith.mulf %10, %11 : vector<16x1xf32>
    %13 = arith.mulf %5, %5 : vector<16x128xf32>
    %cst_7 = arith.constant dense<0.000000e+00> : vector<16xf32>
    %14 = vector.multi_reduction <add>, %13, %cst_7 [1] : vector<16x128xf32> to vector<16xf32>
    %15 = vector.shape_cast %14 : vector<16xf32> to vector<16x1xf32>
    %cst_8 = arith.constant 3.125000e-02 : f32
    %16 = vector.broadcast %cst_8 : f32 to vector<16x1xf32>
    %17 = arith.mulf %15, %16 : vector<16x1xf32>
    %18 = arith.mulf %12, %12 : vector<16x1xf32>
    %19 = arith.subf %17, %18 : vector<16x1xf32>
    %cst_9 = arith.constant 0.000000e+00 : f32
    %20 = vector.broadcast %cst_9 : f32 to vector<16x1xf32>
    %21 = arith.maximumf %19, %20 : vector<16x1xf32>
    %cst_10 = arith.constant 9.99999974E-6 : f32
    %22 = vector.broadcast %cst_10 : f32 to vector<16x1xf32>
    %23 = arith.addf %21, %22 : vector<16x1xf32>
    %24 = math.rsqrt %23 : vector<16x1xf32>
    %cst_11 = arith.constant 0.000000e+00 : f32
    %25 = vector.broadcast %cst_11 : f32 to vector<16x1xf32>
    %26 = arith.subf %25, %12 : vector<16x1xf32>
    %27 = arith.mulf %26, %24 : vector<16x1xf32>
    %28 = vector.broadcast %24 : vector<16x1xf32> to vector<16x128xf32>
    %29 = arith.mulf %5, %28 : vector<16x128xf32>
    %30 = vector.broadcast %27 : vector<16x1xf32> to vector<16x128xf32>
    %31 = arith.addf %29, %30 : vector<16x128xf32>
    %32 = vector.broadcast %7 : vector<1x128xf32> to vector<16x128xf32>
    %33 = arith.mulf %31, %32 : vector<16x128xf32>
    %34 = vector.broadcast %8 : vector<1x128xf32> to vector<16x128xf32>
    %35 = arith.addf %33, %34 : vector<16x128xf32>
    %cst_12 = arith.constant 2.000000e-01 : f32
    %36 = vector.broadcast %cst_12 : f32 to vector<16x128xf32>
    %37 = arith.mulf %36, %35 : vector<16x128xf32>
    %38 = arith.maximumf %35, %37 : vector<16x128xf32>
    %39 = arith.truncf %38 : vector<16x128xf32> to vector<16x128xbf16>
    %c0_13 = arith.constant 0 : index
    %c0_14 = arith.constant 0 : index
    %40 = vector.load %arg3[%c0_13, %c0_14] : memref<128x128xbf16, #tpu.memory_space<vmem>>, vector<128x128xbf16>
    %cst_15 = arith.constant dense<0.000000e+00> : vector<16x128xf32>
    %41 = tpu.matmul %39, %40, %cst_15 {dimension_numbers = #tpu.dot_dimension_numbers<[1], [0], [0], [1], [0, 0, 1, 1], [], []>} : vector<16x128xbf16>, vector<128x128xbf16>, vector<16x128xf32> -> vector<16x128xf32>
    %42 = vector.extract_strided_slice %2 {offsets = [2, 0], sizes = [1, 128], strides = [1, 1]} : vector<8x128xf32> to vector<1x128xf32>
    %43 = vector.extract_strided_slice %2 {offsets = [3, 0], sizes = [1, 128], strides = [1, 1]} : vector<8x128xf32> to vector<1x128xf32>
    %cst_16 = arith.constant dense<0.000000e+00> : vector<16xf32>
    %44 = vector.multi_reduction <add>, %41, %cst_16 [1] : vector<16x128xf32> to vector<16xf32>
    %45 = vector.shape_cast %44 : vector<16xf32> to vector<16x1xf32>
    %cst_17 = arith.constant 3.125000e-02 : f32
    %46 = vector.broadcast %cst_17 : f32 to vector<16x1xf32>
    %47 = arith.mulf %45, %46 : vector<16x1xf32>
    %48 = arith.mulf %41, %41 : vector<16x128xf32>
    %cst_18 = arith.constant dense<0.000000e+00> : vector<16xf32>
    %49 = vector.multi_reduction <add>, %48, %cst_18 [1] : vector<16x128xf32> to vector<16xf32>
    %50 = vector.shape_cast %49 : vector<16xf32> to vector<16x1xf32>
    %cst_19 = arith.constant 3.125000e-02 : f32
    %51 = vector.broadcast %cst_19 : f32 to vector<16x1xf32>
    %52 = arith.mulf %50, %51 : vector<16x1xf32>
    %53 = arith.mulf %47, %47 : vector<16x1xf32>
    %54 = arith.subf %52, %53 : vector<16x1xf32>
    %cst_20 = arith.constant 0.000000e+00 : f32
    %55 = vector.broadcast %cst_20 : f32 to vector<16x1xf32>
    %56 = arith.maximumf %54, %55 : vector<16x1xf32>
    %cst_21 = arith.constant 9.99999974E-6 : f32
    %57 = vector.broadcast %cst_21 : f32 to vector<16x1xf32>
    %58 = arith.addf %56, %57 : vector<16x1xf32>
    %59 = math.rsqrt %58 : vector<16x1xf32>
    %cst_22 = arith.constant 0.000000e+00 : f32
    %60 = vector.broadcast %cst_22 : f32 to vector<16x1xf32>
    %61 = arith.subf %60, %47 : vector<16x1xf32>
    %62 = arith.mulf %61, %59 : vector<16x1xf32>
    %63 = vector.broadcast %59 : vector<16x1xf32> to vector<16x128xf32>
    %64 = arith.mulf %41, %63 : vector<16x128xf32>
    %65 = vector.broadcast %62 : vector<16x1xf32> to vector<16x128xf32>
    %66 = arith.addf %64, %65 : vector<16x128xf32>
    %67 = vector.broadcast %42 : vector<1x128xf32> to vector<16x128xf32>
    %68 = arith.mulf %66, %67 : vector<16x128xf32>
    %69 = vector.broadcast %43 : vector<1x128xf32> to vector<16x128xf32>
    %70 = arith.addf %68, %69 : vector<16x128xf32>
    %cst_23 = arith.constant 2.000000e-01 : f32
    %71 = vector.broadcast %cst_23 : f32 to vector<16x128xf32>
    %72 = arith.mulf %71, %70 : vector<16x128xf32>
    %73 = arith.maximumf %70, %72 : vector<16x128xf32>
    %74 = arith.truncf %73 : vector<16x128xf32> to vector<16x128xbf16>
    %c0_24 = arith.constant 0 : index
    %c0_25 = arith.constant 0 : index
    %75 = vector.load %arg4[%c0_24, %c0_25] : memref<128x128xbf16, #tpu.memory_space<vmem>>, vector<128x128xbf16>
    %cst_26 = arith.constant dense<0.000000e+00> : vector<16x128xf32>
    %76 = tpu.matmul %74, %75, %cst_26 {dimension_numbers = #tpu.dot_dimension_numbers<[1], [0], [0], [1], [0, 0, 1, 1], [], []>} : vector<16x128xbf16>, vector<128x128xbf16>, vector<16x128xf32> -> vector<16x128xf32>
    %77 = vector.extract_strided_slice %2 {offsets = [4, 0], sizes = [1, 128], strides = [1, 1]} : vector<8x128xf32> to vector<1x128xf32>
    %78 = vector.extract_strided_slice %2 {offsets = [5, 0], sizes = [1, 128], strides = [1, 1]} : vector<8x128xf32> to vector<1x128xf32>
    %cst_27 = arith.constant dense<0.000000e+00> : vector<16xf32>
    %79 = vector.multi_reduction <add>, %76, %cst_27 [1] : vector<16x128xf32> to vector<16xf32>
    %80 = vector.shape_cast %79 : vector<16xf32> to vector<16x1xf32>
    %cst_28 = arith.constant 3.125000e-02 : f32
    %81 = vector.broadcast %cst_28 : f32 to vector<16x1xf32>
    %82 = arith.mulf %80, %81 : vector<16x1xf32>
    %83 = arith.mulf %76, %76 : vector<16x128xf32>
    %cst_29 = arith.constant dense<0.000000e+00> : vector<16xf32>
    %84 = vector.multi_reduction <add>, %83, %cst_29 [1] : vector<16x128xf32> to vector<16xf32>
    %85 = vector.shape_cast %84 : vector<16xf32> to vector<16x1xf32>
    %cst_30 = arith.constant 3.125000e-02 : f32
    %86 = vector.broadcast %cst_30 : f32 to vector<16x1xf32>
    %87 = arith.mulf %85, %86 : vector<16x1xf32>
    %88 = arith.mulf %82, %82 : vector<16x1xf32>
    %89 = arith.subf %87, %88 : vector<16x1xf32>
    %cst_31 = arith.constant 0.000000e+00 : f32
    %90 = vector.broadcast %cst_31 : f32 to vector<16x1xf32>
    %91 = arith.maximumf %89, %90 : vector<16x1xf32>
    %cst_32 = arith.constant 9.99999974E-6 : f32
    %92 = vector.broadcast %cst_32 : f32 to vector<16x1xf32>
    %93 = arith.addf %91, %92 : vector<16x1xf32>
    %94 = math.rsqrt %93 : vector<16x1xf32>
    %cst_33 = arith.constant 0.000000e+00 : f32
    %95 = vector.broadcast %cst_33 : f32 to vector<16x1xf32>
    %96 = arith.subf %95, %82 : vector<16x1xf32>
    %97 = arith.mulf %96, %94 : vector<16x1xf32>
    %98 = vector.broadcast %94 : vector<16x1xf32> to vector<16x128xf32>
    %99 = arith.mulf %76, %98 : vector<16x128xf32>
    %100 = vector.broadcast %97 : vector<16x1xf32> to vector<16x128xf32>
    %101 = arith.addf %99, %100 : vector<16x128xf32>
    %102 = vector.broadcast %77 : vector<1x128xf32> to vector<16x128xf32>
    %103 = arith.mulf %101, %102 : vector<16x128xf32>
    %104 = vector.broadcast %78 : vector<1x128xf32> to vector<16x128xf32>
    %105 = arith.addf %103, %104 : vector<16x128xf32>
    %106 = arith.addf %105, %6 : vector<16x128xf32>
    %cst_34 = arith.constant 2.000000e-01 : f32
    %107 = vector.broadcast %cst_34 : f32 to vector<16x128xf32>
    %108 = arith.mulf %107, %106 : vector<16x128xf32>
    %109 = arith.maximumf %106, %108 : vector<16x128xf32>
    %c0_35 = arith.constant 0 : index
    %c0_36 = arith.constant 0 : index
    %110 = vector.load %arg6[%c0_35, %c0_36] : memref<16x128xf32, #tpu.memory_space<vmem>>, vector<16x128xf32>
    tpu.vector_store %arg6[%c0_35, %c0_36], %109 {strides = array<i32>} : memref<16x128xf32, #tpu.memory_space<vmem>>, vector<16x128xf32>,
    return
  }
  func.func @transform_0(%arg0: i32) -> (i32, i32) {
    %c0_i32 = arith.constant 0 : i32
    %c0_i32_0 = arith.constant 0 : i32
    return %arg0, %c0_i32 : i32, i32
  }
  func.func @transform_1(%arg0: i32) -> (i32, i32) {
    %c0_i32 = arith.constant 0 : i32
    %c0_i32_0 = arith.constant 0 : i32
    %c0_i32_1 = arith.constant 0 : i32
    return %c0_i32, %c0_i32_0 : i32, i32
  }
  func.func @transform_2(%arg0: i32) -> (i32, i32) {
    %c0_i32 = arith.constant 0 : i32
    %c0_i32_0 = arith.constant 0 : i32
    %c0_i32_1 = arith.constant 0 : i32
    return %c0_i32, %c0_i32_0 : i32, i32
  }
  func.func @transform_3(%arg0: i32) -> (i32, i32) {
    %c0_i32 = arith.constant 0 : i32
    %c0_i32_0 = arith.constant 0 : i32
    %c0_i32_1 = arith.constant 0 : i32
    return %c0_i32, %c0_i32_0 : i32, i32
  }
  func.func @transform_4(%arg0: i32) -> (i32, i32) {
    %c0_i32 = arith.constant 0 : i32
    %c0_i32_0 = arith.constant 0 : i32
    %c0_i32_1 = arith.constant 0 : i32
    return %c0_i32, %c0_i32_0 : i32, i32
  }
  func.func @transform_5(%arg0: i32) -> (i32, i32) {
    %c0_i32 = arith.constant 0 : i32
    %c0_i32_0 = arith.constant 0 : i32
    return %arg0, %c0_i32 : i32, i32
  }
}

module attributes {stable_mosaic.version = 11 : i64} {
  func.func @_fcres_kernel(%arg0: i32, %arg1: memref<16x16xf32, #tpu.memory_space<vmem>>, %arg2: memref<16x256xbf16, #tpu.memory_space<vmem>>, %arg3: memref<128x128xbf16, #tpu.memory_space<vmem>>, %arg4: memref<128x128xbf16, #tpu.memory_space<vmem>>, %arg5: memref<8x128xf32, #tpu.memory_space<vmem>>, %arg6: memref<16x128xf32, #tpu.memory_space<vmem>>) attributes {dimension_semantics = [#tpu.dimension_semantics<parallel>], iteration_bounds = array<i64: 1>, scalar_prefetch = 0 : i64, scratch_operands = 0 : i64, tpu.core_type = #tpu.core_type<tc>, window_params = [{transform_indices = @transform_0, window_bounds = array<i64: 16, 16>}, {pipeline_mode = #tpu.pipeline_mode<synchronous>, transform_indices = @transform_1, window_bounds = array<i64: 16, 256>}, {pipeline_mode = #tpu.pipeline_mode<synchronous>, transform_indices = @transform_2, window_bounds = array<i64: 128, 128>}, {pipeline_mode = #tpu.pipeline_mode<synchronous>, transform_indices = @transform_3, window_bounds = array<i64: 128, 128>}, {pipeline_mode = #tpu.pipeline_mode<synchronous>, transform_indices = @transform_4, window_bounds = array<i64: 8, 128>}, {transform_indices = @transform_5, window_bounds = array<i64: 16, 128>}]} {
    %c0 = arith.constant 0 : index
    %c0_0 = arith.constant 0 : index
    %0 = vector.load %arg1[%c0, %c0_0] : memref<16x16xf32, #tpu.memory_space<vmem>>, vector<16x16xf32>
    %1 = arith.truncf %0 : vector<16x16xf32> to vector<16x16xbf16>
    %c0_1 = arith.constant 0 : index
    %c0_2 = arith.constant 0 : index
    %2 = vector.load %arg5[%c0_1, %c0_2] : memref<8x128xf32, #tpu.memory_space<vmem>>, vector<8x128xf32>
    %c0_3 = arith.constant 0 : index
    %c0_4 = arith.constant 0 : index
    %3 = vector.load %arg2[%c0_3, %c0_4] : memref<16x256xbf16, #tpu.memory_space<vmem>>, vector<16x256xbf16>
    %cst = arith.constant dense<0.000000e+00> : vector<16x256xf32>
    %4 = tpu.matmul %1, %3, %cst {dimension_numbers = #tpu.dot_dimension_numbers<[1], [0], [0], [1], [0, 0, 1, 1], [], []>} : vector<16x16xbf16>, vector<16x256xbf16>, vector<16x256xf32> -> vector<16x256xf32>
    %5 = vector.extract_strided_slice %4 {offsets = [0, 0], sizes = [16, 128], strides = [1, 1]} : vector<16x256xf32> to vector<16x128xf32>
    %6 = vector.extract_strided_slice %4 {offsets = [0, 128], sizes = [16, 128], strides = [1, 1]} : vector<16x256xf32> to vector<16x128xf32>
    %7 = vector.extract_strided_slice %2 {offsets = [0, 0], sizes = [1, 128], strides = [1, 1]} : vector<8x128xf32> to vector<1x128xf32>
    %8 = vector.extract_strided_slice %2 {offsets = [1, 0], sizes = [1, 128], strides = [1, 1]} : vector<8x128xf32> to vector<1x128xf32>
    %cst_5 = arith.constant dense<0.000000e+00> : vector<16xf32>
    %9 = vector.multi_reduction <add>, %5, %cst_5 [1] : vector<16x128xf32> to vector<16xf32>
    %10 = vector.shape_cast %9 : vector<16xf32> to vector<16x1xf32>
    %cst_6 = arith.constant 3.125000e-02 : f32
    %11 = vector.broadcast %cst_6 : f32 to vector<16x1xf32>
    %12 = arith.mulf %10, %11 : vector<16x1xf32>
    %13 = arith.mulf %5, %5 : vector<16x128xf32>
    %cst_7 = arith.constant dense<0.000000e+00> : vector<16xf32>
    %14 = vector.multi_reduction <add>, %13, %cst_7 [1] : vector<16x128xf32> to vector<16xf32>
    %15 = vector.shape_cast %14 : vector<16xf32> to vector<16x1xf32>
    %cst_8 = arith.constant 3.125000e-02 : f32
    %16 = vector.broadcast %cst_8 : f32 to vector<16x1xf32>
    %17 = arith.mulf %15, %16 : vector<16x1xf32>
    %18 = arith.mulf %12, %12 : vector<16x1xf32>
    %19 = arith.subf %17, %18 : vector<16x1xf32>
    %cst_9 = arith.constant 0.000000e+00 : f32
    %20 = vector.broadcast %cst_9 : f32 to vector<16x1xf32>
    %21 = arith.maximumf %19, %20 : vector<16x1xf32>
    %cst_10 = arith.constant 9.99999974E-6 : f32
    %22 = vector.broadcast %cst_10 : f32 to vector<16x1xf32>
    %23 = arith.addf %21, %22 : vector<16x1xf32>
    %24 = math.rsqrt %23 : vector<16x1xf32>
    %cst_11 = arith.constant 0.000000e+00 : f32
    %25 = vector.broadcast %cst_11 : f32 to vector<16x1xf32>
    %26 = arith.subf %25, %12 : vector<16x1xf32>
    %27 = arith.mulf %26, %24 : vector<16x1xf32>
    %28 = vector.broadcast %24 : vector<16x1xf32> to vector<16x128xf32>
    %29 = arith.mulf %5, %28 : vector<16x128xf32>
    %30 = vector.broadcast %27 : vector<16x1xf32> to vector<16x128xf32>
    %31 = arith.addf %29, %30 : vector<16x128xf32>
    %32 = vector.broadcast %7 : vector<1x128xf32> to vector<16x128xf32>
    %33 = arith.mulf %31, %32 : vector<16x128xf32>
    %34 = vector.broadcast %8 : vector<1x128xf32> to vector<16x128xf32>
    %35 = arith.addf %33, %34 : vector<16x128xf32>
    %cst_12 = arith.constant 2.000000e-01 : f32
    %36 = vector.broadcast %cst_12 : f32 to vector<16x128xf32>
    %37 = arith.mulf %36, %35 : vector<16x128xf32>
    %38 = arith.maximumf %35, %37 : vector<16x128xf32>
    %39 = arith.truncf %38 : vector<16x128xf32> to vector<16x128xbf16>
    %c0_13 = arith.constant 0 : index
    %c0_14 = arith.constant 0 : index
    %40 = vector.load %arg3[%c0_13, %c0_14] : memref<128x128xbf16, #tpu.memory_space<vmem>>, vector<128x128xbf16>
    %cst_15 = arith.constant dense<0.000000e+00> : vector<16x128xf32>
    %41 = tpu.matmul %39, %40, %cst_15 {dimension_numbers = #tpu.dot_dimension_numbers<[1], [0], [0], [1], [0, 0, 1, 1], [], []>} : vector<16x128xbf16>, vector<128x128xbf16>, vector<16x128xf32> -> vector<16x128xf32>
    %42 = vector.extract_strided_slice %2 {offsets = [2, 0], sizes = [1, 128], strides = [1, 1]} : vector<8x128xf32> to vector<1x128xf32>
    %43 = vector.extract_strided_slice %2 {offsets = [3, 0], sizes = [1, 128], strides = [1, 1]} : vector<8x128xf32> to vector<1x128xf32>
    %cst_16 = arith.constant dense<0.000000e+00> : vector<16xf32>
    %44 = vector.multi_reduction <add>, %41, %cst_16 [1] : vector<16x128xf32> to vector<16xf32>
    %45 = vector.shape_cast %44 : vector<16xf32> to vector<16x1xf32>
    %cst_17 = arith.constant 3.125000e-02 : f32
    %46 = vector.broadcast %cst_17 : f32 to vector<16x1xf32>
    %47 = arith.mulf %45, %46 : vector<16x1xf32>
    %48 = arith.mulf %41, %41 : vector<16x128xf32>
    %cst_18 = arith.constant dense<0.000000e+00> : vector<16xf32>
    %49 = vector.multi_reduction <add>, %48, %cst_18 [1] : vector<16x128xf32> to vector<16xf32>
    %50 = vector.shape_cast %49 : vector<16xf32> to vector<16x1xf32>
    %cst_19 = arith.constant 3.125000e-02 : f32
    %51 = vector.broadcast %cst_19 : f32 to vector<16x1xf32>
    %52 = arith.mulf %50, %51 : vector<16x1xf32>
    %53 = arith.mulf %47, %47 : vector<16x1xf32>
    %54 = arith.subf %52, %53 : vector<16x1xf32>
    %cst_20 = arith.constant 0.000000e+00 : f32
    %55 = vector.broadcast %cst_20 : f32 to vector<16x1xf32>
    %56 = arith.maximumf %54, %55 : vector<16x1xf32>
    %cst_21 = arith.constant 9.99999974E-6 : f32
    %57 = vector.broadcast %cst_21 : f32 to vector<16x1xf32>
    %58 = arith.addf %56, %57 : vector<16x1xf32>
    %59 = math.rsqrt %58 : vector<16x1xf32>
    %cst_22 = arith.constant 0.000000e+00 : f32
    %60 = vector.broadcast %cst_22 : f32 to vector<16x1xf32>
    %61 = arith.subf %60, %47 : vector<16x1xf32>
    %62 = arith.mulf %61, %59 : vector<16x1xf32>
    %63 = vector.broadcast %59 : vector<16x1xf32> to vector<16x128xf32>
    %64 = arith.mulf %41, %63 : vector<16x128xf32>
    %65 = vector.broadcast %62 : vector<16x1xf32> to vector<16x128xf32>
    %66 = arith.addf %64, %65 : vector<16x128xf32>
    %67 = vector.broadcast %42 : vector<1x128xf32> to vector<16x128xf32>
    %68 = arith.mulf %66, %67 : vector<16x128xf32>
    %69 = vector.broadcast %43 : vector<1x128xf32> to vector<16x128xf32>
    %70 = arith.addf %68, %69 : vector<16x128xf32>
    %cst_23 = arith.constant 2.000000e-01 : f32
    %71 = vector.broadcast %cst_23 : f32 to vector<16x128xf32>
    %72 = arith.mulf %71, %70 : vector<16x128xf32>
    %73 = arith.maximumf %70, %72 : vector<16x128xf32>
    %74 = arith.truncf %73 : vector<16x128xf32> to vector<16x128xbf16>
    %c0_24 = arith.constant 0 : index
    %c0_25 = arith.constant 0 : index
    %75 = vector.load %arg4[%c0_24, %c0_25] : memref<128x128xbf16, #tpu.memory_space<vmem>>, vector<128x128xbf16>
    %cst_26 = arith.constant dense<0.000000e+00> : vector<16x128xf32>
    %76 = tpu.matmul %74, %75, %cst_26 {dimension_numbers = #tpu.dot_dimension_numbers<[1], [0], [0], [1], [0, 0, 1, 1], [], []>} : vector<16x128xbf16>, vector<128x128xbf16>, vector<16x128xf32> -> vector<16x128xf32>
    %77 = vector.extract_strided_slice %2 {offsets = [4, 0], sizes = [1, 128], strides = [1, 1]} : vector<8x128xf32> to vector<1x128xf32>
    %78 = vector.extract_strided_slice %2 {offsets = [5, 0], sizes = [1, 128], strides = [1, 1]} : vector<8x128xf32> to vector<1x128xf32>
    %cst_27 = arith.constant dense<0.000000e+00> : vector<16xf32>
    %79 = vector.multi_reduction <add>, %76, %cst_27 [1] : vector<16x128xf32> to vector<16xf32>
    %80 = vector.shape_cast %79 : vector<16xf32> to vector<16x1xf32>
    %cst_28 = arith.constant 3.125000e-02 : f32
    %81 = vector.broadcast %cst_28 : f32 to vector<16x1xf32>
    %82 = arith.mulf %80, %81 : vector<16x1xf32>
    %83 = arith.mulf %76, %76 : vector<16x128xf32>
    %cst_29 = arith.constant dense<0.000000e+00> : vector<16xf32>
    %84 = vector.multi_reduction <add>, %83, %cst_29 [1] : vector<16x128xf32> to vector<16xf32>
    %85 = vector.shape_cast %84 : vector<16xf32> to vector<16x1xf32>
    %cst_30 = arith.constant 3.125000e-02 : f32
    %86 = vector.broadcast %cst_30 : f32 to vector<16x1xf32>
    %87 = arith.mulf %85, %86 : vector<16x1xf32>
    %88 = arith.mulf %82, %82 : vector<16x1xf32>
    %89 = arith.subf %87, %88 : vector<16x1xf32>
    %cst_31 = arith.constant 0.000000e+00 : f32
    %90 = vector.broadcast %cst_31 : f32 to vector<16x1xf32>
    %91 = arith.maximumf %89, %90 : vector<16x1xf32>
    %cst_32 = arith.constant 9.99999974E-6 : f32
    %92 = vector.broadcast %cst_32 : f32 to vector<16x1xf32>
    %93 = arith.addf %91, %92 : vector<16x1xf32>
    %94 = math.rsqrt %93 : vector<16x1xf32>
    %cst_33 = arith.constant 0.000000e+00 : f32
    %95 = vector.broadcast %cst_33 : f32 to vector<16x1xf32>
    %96 = arith.subf %95, %82 : vector<16x1xf32>
    %97 = arith.mulf %96, %94 : vector<16x1xf32>
    %98 = vector.broadcast %94 : vector<16x1xf32> to vector<16x128xf32>
    %99 = arith.mulf %76, %98 : vector<16x128xf32>
    %100 = vector.broadcast %97 : vector<16x1xf32> to vector<16x128xf32>
    %101 = arith.addf %99, %100 : vector<16x128xf32>
    %102 = vector.broadcast %77 : vector<1x128xf32> to vector<16x128xf32>
    %103 = arith.mulf %101, %102 : vector<16x128xf32>
    %104 = vector.broadcast %78 : vector<1x128xf32> to vector<16x128xf32>
    %105 = arith.addf %103, %104 : vector<16x128xf32>
    %106 = arith.addf %105, %6 : vector<16x128xf32>
    %cst_34 = arith.constant 2.000000e-01 : f32
    %107 = vector.broadcast %cst_34 : f32 to vector<16x128xf32>
    %108 = arith.mulf %107, %106 : vector<16x128xf32>
    %109 = arith.maximumf %106, %108 : vector<16x128xf32>
    %c0_35 = arith.constant 0 : index
    %c0_36 = arith.constant 0 : index
    %110 = vector.load %arg6[%c0_35, %c0_36] : memref<16x128xf32, #tpu.memory_space<vmem>>, vector<16x128xf32>
    tpu.vector_store %arg6[%c0_35, %c0_36], %109 {strides = array<i32>} : memref<16x128xf32, #tpu.memory_space<vmem>>, vector<16x128xf32>,
    return
  }
  func.func @transform_0(%arg0: i32) -> (i32, i32) {
    %c0_i32 = arith.constant 0 : i32
    %c0_i32_0 = arith.constant 0 : i32
    return %arg0, %c0_i32 : i32, i32
  }
  func.func @transform_1(%arg0: i32) -> (i32, i32) {
    %c0_i32 = arith.constant 0 : i32
    %c0_i32_0 = arith.constant 0 : i32
    %c0_i32_1 = arith.constant 0 : i32
    return %c0_i32, %c0_i32_0 : i32, i32
  }
  func.func @transform_2(%arg0: i32) -> (i32, i32) {
    %c0_i32 = arith.constant 0 : i32
    %c0_i32_0 = arith.constant 0 : i32
    %c0_i32_1 = arith.constant 0 : i32
    return %c0_i32, %c0_i32_0 : i32, i32
  }
  func.func @transform_3(%arg0: i32) -> (i32, i32) {
    %c0_i32 = arith.constant 0 : i32
    %c0_i32_0 = arith.constant 0 : i32
    %c0_i32_1 = arith.constant 0 : i32
    return %c0_i32, %c0_i32_0 : i32, i32
  }
  func.func @transform_4(%arg0: i32) -> (i32, i32) {
    %c0_i32 = arith.constant 0 : i32
    %c0_i32_0 = arith.constant 0 : i32
    %c0_i32_1 = arith.constant 0 : i32
    return %c0_i32, %c0_i32_0 : i32, i32
  }
  func.func @transform_5(%arg0: i32) -> (i32, i32) {
    %c0_i32 = arith.constant 0 : i32
    %c0_i32_0 = arith.constant 0 : i32
    return %arg0, %c0_i32 : i32, i32
  }
}

</mosaic_0001>

<bundles_post_ra>
// kernel: tpu_custom_call.1
= control target key start
LH: loop header
LB: loop body
LE: loop exit
PB: predicated region body
PF: predicated region fallthrough
CT: control target
= control target key end

     0   :  { %10 = vsyncpa [#allocation3], 0  ;;  %s868_s0 = inlined_call_operand.hbm [shape: f32[16,16], index: 0, kind: input, shape index: {}]   ;;  %s869_s1 = inlined_call_operand.hbm [shape: bf16[16,256], index: 1, kind: input, shape index: {}]   ;;  %s870_s2 = inlined_call_operand.hbm [shape: bf16[128,128], index: 2, kind: input, shape index: {}]   ;;  %s871_s3 = inlined_call_operand.hbm [shape: bf16[128,128], index: 3, kind: input, shape index: {}]   ;;  %s872_s4 = inlined_call_operand.hbm [shape: f32[8,128], index: 4, kind: input, shape index: {}]   ;;  %s873_s5 = inlined_call_operand.hbm [shape: f32[16,128], index: 5, kind: output, shape index: {}]  }
   0x1   :  { %11 = vsyncpa [#allocation6], 0 }
   0x2   :  { %12 = vsyncpa [#allocation9], 0 }
   0x3   :  { %13 = vsyncpa [#allocation4], 0  ;;  %s31_s20 = sshll.u32 %s869_s1, 4  ;;  %s775_s21 = smov [#allocation5]   ;;  %s32_s20 = int_to_ptr.hbm [resolvable:$true] %s31_s20 }
   0x4   :  { %s33_s22 = sshll.u32 %s775_s21, 4  ;;  %s776_s23 = smov 128   ;;  %s34_s22 = int_to_ptr.vmem [resolvable:$true] %s33_s22 }
   0x5   :  { %s777_s24 = smov 8   ;;  %s57_s27 = sshll.u32 %s871_s3, 4  ;;  %s58_s27 = int_to_ptr.hbm [resolvable:$true] %s57_s27 }
   0x6   :  { %39 = dma.hbm_to_vmem [thread:$0]  %s32_s20, 256, %s34_s22, [#allocation6], %s776_s23, %s776_s23, %s777_s24  }
   0x7   :  { %s778_s28 = smov [#allocation8]   ;;  %s18_s1 = sshll.u32 %s868_s0, 4  ;;  %s19_s1 = int_to_ptr.hbm [resolvable:$true] %s18_s1 }
   0x8   :  { %s59_s29 = sshll.u32 %s778_s28, 4  ;;  %s779_s7 = smov 64   ;;  %s60_s29 = int_to_ptr.vmem [resolvable:$true] %s59_s29 }
   0x9   :  { %s780_s8 = smov 4   ;;  %s44_s11 = sshll.u32 %s870_s2, 4  ;;  %s45_s11 = int_to_ptr.hbm [resolvable:$true] %s44_s11 }
   0xa   :  { %65 = dma.hbm_to_vmem [thread:$0]  %s58_s27, 1024, %s60_s29, [#allocation9], %s779_s7, %s779_s7, %s780_s8  }
   0xb   :  { %s781_s12 = smov [#allocation2]   ;;  %s782_s3 = smov [#allocation7]  }
   0xc   :  { %s20_s13 = sshll.u32 %s781_s12, 4  ;;  %s46_s14 = sshll.u32 %s782_s3, 4  ;;  %s21_s13 = int_to_ptr.vmem [resolvable:$true] %s20_s13  ;;  %s47_s14 = int_to_ptr.vmem [resolvable:$true] %s46_s14 }
   0xd   :  { %26 = dma.hbm_to_vmem [thread:$0]  %s19_s1, 256, %s21_s13, [#allocation3], %s776_s23, %s776_s23, %s777_s24  }
   0xe   :  { %s71_s16 = sshll.u32 %s872_s4, 4  ;;  %s783_s17 = smov [#allocation10]   ;;  %s72_s16 = int_to_ptr.hbm [resolvable:$true] %s71_s16 }
   0xf   :  { %52 = dma.hbm_to_vmem [thread:$0]  %s45_s11, 1024, %s47_s14, [#allocation6], %s779_s7, %s779_s7, %s780_s8  }
  0x10   :  { %s73_s18 = sshll.u32 %s783_s17, 4  ;;  %s74_s18 = int_to_ptr.vmem [resolvable:$true] %s73_s18 }
  0x11   :  { %76 = dma.hbm_to_vmem [thread:$0]  %s72_s16, 128, %s74_s18, [#allocation9]  }
  0x12   :  { %767 = dma.done.wait [#allocation3], 256  }
  0x13   :  { %768 = vsyncadd [#allocation3], 4294967040 }
  0x14   :  { %769 = dma.done.wait [#allocation6], 1280  }
  0x15   :  { %770 = vsyncadd [#allocation6], 4294966016 }
  0x16   :  { %771 = dma.done.wait [#allocation9], 1152  }
  0x17   :  { %772 = vsyncadd [#allocation9], 4294966144  ;;  %v511_v0 = vld [vmem:[#allocation5] sm:$0xf]  ;;  %v584_v1 = vld [vmem:[#allocation5 + $0x4] sm:$0xf0] }
  0x18   :  { %v98_v2 = vld [vmem:[#allocation2] sm:$0xff]  ;;  %v512_v3 = vor.u32 %v584_v1, %v511_v0  ;;  %v99_v4 = vld [vmem:[#allocation2 + $0x8] sm:$0xff]  ;;  %vm114_vm0 = vcmask 130048   ;;  %v592_v10 = vld [vmem:[#allocation7 + $0x38] sm:$0xff]  ;;  %s784_s2 = smov [#allocation11]   ;;  %s494_s21 = sshll.u32 %s873_s5, 4  ;;  %s495_s21 = int_to_ptr.hbm [resolvable:$true] %s494_s21 }
  0x19   :  { %v836_v5 = vpack.c.bf16 %v99_v4, %v98_v2  ;;  %271 = vmatpush.bf16.msra.mxu2 %v592_v10  ;;  %v591_v11 = vld [vmem:[#allocation7 + $0x30] sm:$0xff]  ;;  %v590_v12 = vld [vmem:[#allocation7 + $0x28] sm:$0xff]  ;;  %v589_v13 = vld [vmem:[#allocation7 + $0x20] sm:$0xff]  ;;  %s492_s4 = sshll.u32 %s784_s2, 4  ;;  %s493_s4 = int_to_ptr.vmem [resolvable:$true] %s492_s4 }
  0x1a   :  { %125 = vmatpush.bf16.msra.mxu0 %v512_v3  ;;  %v588_v19 = vld [vmem:[#allocation7 + $0x18] sm:$0xff]  ;;  %v587_v21 = vld [vmem:[#allocation7 + $0x10] sm:$0xff]  ;;  %v586_v26 = vld [vmem:[#allocation7 + $0x8] sm:$0xff] }
  0x1b   :  { %v585_v30 = vld [vmem:[#allocation7] sm:$0xff]  ;;  %v599_v10 = vld [vmem:[#allocation8 + $0x30] sm:$0xff] }
  0x1c   :  { %v845_v45 = vld [vmem:[#allocation10] sm:$0xff] }
  0x1d   :  { %517 = vmatmul.msk.bf16.vlgmr.msra.gmra.mxu0 %vm114_vm0, %v836_v5  ;;  %272 = vmatpush.bf16.msra.mxu2 %v591_v11  ;;  %v196_v50 = vperm.slane %v845_v45, 0  ;;  %v199_v55 = vperm.slane %v845_v45, 1  ;;  %v598_v11 = vld [vmem:[#allocation8 + $0x28] sm:$0xff] }
  0x21   :  { %273 = vmatpush.bf16.msra.mxu2 %v590_v12  ;;  %v597_v12 = vld [vmem:[#allocation8 + $0x20] sm:$0xff] }
  0x25   :  { %274 = vmatpush.bf16.msra.mxu2 %v589_v13 }
  0x29   :  { %275 = vmatpush.bf16.msra.mxu2 %v588_v19 }
  0x2d   :  { %276 = vmatpush.bf16.msra.mxu2 %v587_v21 }
  0x31   :  { %277 = vmatpush.bf16.msra.mxu2 %v586_v26 }
  0x35   :  { %278 = vmatpush.bf16.msra.mxu2 %v585_v30 }
  0x9a   :  { %v127_v6 = vpop.f32.mrf.mxu0 }
  0x9b   :  { %146 = vadd.xlane.f32.xlu0 %v127_v6  ;;  %v152_v7 = vmul.f32 %v127_v6, %v127_v6 }
  0x9d   :  { %154 = vadd.xlane.f32.xlu1 %v152_v7 }
  0xa2   :  { %v840_v8 = vpop.f32.mrf.mxu0 }
  0xa3   :  { %148 = vadd.xlane.f32.xlu0 %v840_v8  ;;  %v153_v9 = vmul.f32 %v840_v8, %v840_v8 }
  0xa5   :  { %156 = vadd.xlane.f32.xlu1 %v153_v9  ;;  %v600_v9 = vld [vmem:[#allocation8 + $0x38] sm:$0xff] }
  0xa6   :  { %410 = vmatpush.bf16.msra.mxu3 %v600_v9 }
  0xaa   :  { %411 = vmatpush.bf16.msra.mxu3 %v599_v10 }
  0xae   :  { %412 = vmatpush.bf16.msra.mxu3 %v598_v11 }
  0xb2   :  { %413 = vmatpush.bf16.msra.mxu3 %v597_v12 }
 0x10e   :  { %v147_v14 = vpop.xlane.xlu0 %146 }
 0x10f   :  { %v150_v15 = vmul.f32 0.03125, %v147_v14 }
 0x110   :  { %v155_v16 = vpop.xlane.xlu1 %154 }
 0x111   :  { %v160_v17 = vmul.f32 %v150_v15, %v150_v15  ;;  %v158_v18 = vmul.f32 0.03125, %v155_v16  ;;  %v188_v41 = vsub.f32 0.0, %v150_v15 }
 0x113   :  { %v162_v20 = vsub.f32 %v158_v18, %v160_v17  ;;  %v596_v18 = vld [vmem:[#allocation8 + $0x18] sm:$0xff] }
 0x114   :  { %414 = vmatpush.bf16.msra.mxu3 %v596_v18 }
 0x115   :  { %v164_v22 = vmax.f32 %v162_v20, 0.0  ;;  %v595_v20 = vld [vmem:[#allocation8 + $0x10] sm:$0xff] }
 0x116   :  { %v149_v23 = vpop.xlane.xlu0 %148 }
 0x117   :  { %v166_v24 = vadd.f32 1e-05, %v164_v22  ;;  %v151_v25 = vmul.f32 0.03125, %v149_v23 }
 0x118   :  { %v157_v27 = vpop.xlane.xlu1 %156  ;;  %415 = vmatpush.bf16.msra.mxu3 %v595_v20 }
 0x119   :  { %611 = vrsqrt.f32 %v166_v24  ;;  %v161_v28 = vmul.f32 %v151_v25, %v151_v25  ;;  %v159_v29 = vmul.f32 0.03125, %v157_v27  ;;  %vm174_vm2 = vweird.f32 %v166_v24 }
 0x11a   :  { %v189_v53 = vsub.f32 0.0, %v151_v25  ;;  %v594_v25 = vld [vmem:[#allocation8 + $0x8] sm:$0xff] }
 0x11b   :  { %v163_v31 = vsub.f32 %v159_v29, %v161_v28  ;;  %v593_v29 = vld [vmem:[#allocation8] sm:$0xff] }
 0x11c   :  { %416 = vmatpush.bf16.msra.mxu3 %v594_v25 }
 0x11d   :  { %v165_v32 = vmax.f32 %v163_v31, 0.0 }
 0x11f   :  { %v612_v33 = vpop.eup %611  ;;  %v167_v35 = vadd.f32 1e-05, %v165_v32 }
 0x120   :  { %v169_v34 = vmul.f32 %v612_v33, %v166_v24  ;;  %vm175_vm1 = vweird.f32 %v612_v33  ;;  %417 = vmatpush.bf16.msra.mxu3 %v593_v29 }
 0x121   :  { %613 = vrsqrt.f32 %v167_v35  ;;  %vm176_vm3 = vmor %vm174_vm2, %vm175_vm1  ;;  %vm184_vm5 = vweird.f32 %v167_v35 }
 0x122   :  { %v170_v36 = vmul.f32 %v612_v33, %v169_v34 }
 0x124   :  { %v171_v37 = vmul.f32 0.5, %v170_v36 }
 0x126   :  { %v172_v38 = vsub.f32 1.5, %v171_v37 }
 0x127   :  { %v614_v39 = vpop.eup %613 }
 0x128   :  { %v173_v40 = vmul.f32 %v612_v33, %v172_v38  ;;  %v179_v42 = vmul.f32 %v614_v39, %v167_v35  ;;  %vm185_vm4 = vweird.f32 %v614_v39 }
 0x129   :  { %vm186_vm6 = vmor %vm184_vm5, %vm185_vm4 }
 0x12a   :  { %v177_v43 = vsel %vm176_vm3, %v612_v33, %v173_v40  ;;  %v180_v44 = vmul.f32 %v614_v39, %v179_v42 }
 0x12b   :  { %v190_v46 = vmul.f32 %v188_v41, %v177_v43  ;;  %v192_v47 = vmul.f32 %v177_v43, %v127_v6 }
 0x12c   :  { %v181_v48 = vmul.f32 0.5, %v180_v44 }
 0x12d   :  { %v194_v49 = vadd.f32 %v192_v47, %v190_v46 }
 0x12e   :  { %v182_v51 = vsub.f32 1.5, %v181_v48 }
 0x12f   :  { %v197_v54 = vmul.f32 %v196_v50, %v194_v49  ;;  %v335_v49 = vperm.slane %v845_v45, 2 }
 0x130   :  { %v183_v52 = vmul.f32 %v614_v39, %v182_v51 }
 0x131   :  { %v200_v60 = vadd.f32 %v199_v55, %v197_v54  ;;  %v338_v54 = vperm.slane %v845_v45, 3 }
 0x132   :  { %v187_v56 = vsel %vm186_vm6, %v614_v39, %v183_v52 }
 0x133   :  { %v191_v57 = vmul.f32 %v189_v53, %v187_v56  ;;  %v193_v58 = vmul.f32 %v187_v56, %v840_v8  ;;  %v202_v63 = vmul.f32 0.2, %v200_v60 }
 0x135   :  { %v195_v59 = vadd.f32 %v193_v58, %v191_v57  ;;  %v204_v1 = vmax.f32 %v200_v60, %v202_v63 }
 0x137   :  { %v198_v61 = vmul.f32 %v196_v50, %v195_v59 }
 0x139   :  { %v201_v62 = vadd.f32 %v199_v55, %v198_v61 }
 0x13b   :  { %v203_v0 = vmul.f32 0.2, %v201_v62 }
 0x13d   :  { %v205_v2 = vmax.f32 %v201_v62, %v203_v0 }
 0x13f   :  { %v206_v3 = vpack.c.bf16 %v205_v2, %v204_v1 }
 0x141   :  { %279 = vmatmul.bf16.vlgmr.msra.gmra.mxu2 %v206_v3  ;;  %v583_v3 = vld [vmem:[#allocation5 + $0x4] sm:$0xf] }
 0x1c4   :  { %v280_v4 = vpop.f32.mrf.mxu2 }
 0x1c5   :  { %285 = vadd.xlane.f32.xlu2 %v280_v4  ;;  %v291_v6 = vmul.f32 %v280_v4, %v280_v4 }
 0x1c7   :  { %293 = vadd.xlane.f32.xlu0 %v291_v6 }
 0x1cc   :  { %v850_v7 = vpop.f32.mrf.mxu2 }
 0x1cd   :  { %287 = vadd.xlane.f32.xlu2 %v850_v7  ;;  %v292_v8 = vmul.f32 %v850_v7, %v850_v7 }
 0x1cf   :  { %295 = vadd.xlane.f32.xlu1 %v292_v8 }
 0x238   :  { %v286_v13 = vpop.xlane.xlu2 %285 }
 0x239   :  { %v289_v14 = vmul.f32 0.03125, %v286_v13 }
 0x23a   :  { %v294_v15 = vpop.xlane.xlu0 %293 }
 0x23b   :  { %v299_v16 = vmul.f32 %v289_v14, %v289_v14  ;;  %v297_v17 = vmul.f32 0.03125, %v294_v15  ;;  %v327_v40 = vsub.f32 0.0, %v289_v14 }
 0x23d   :  { %v301_v19 = vsub.f32 %v297_v17, %v299_v16 }
 0x23f   :  { %v303_v21 = vmax.f32 %v301_v19, 0.0 }
 0x240   :  { %v288_v22 = vpop.xlane.xlu2 %287 }
 0x241   :  { %v305_v23 = vadd.f32 1e-05, %v303_v21  ;;  %v290_v24 = vmul.f32 0.03125, %v288_v22 }
 0x242   :  { %v296_v26 = vpop.xlane.xlu1 %295 }
 0x243   :  { %615 = vrsqrt.f32 %v305_v23  ;;  %v300_v27 = vmul.f32 %v290_v24, %v290_v24  ;;  %v298_v28 = vmul.f32 0.03125, %v296_v26  ;;  %vm313_vm8 = vweird.f32 %v305_v23 }
 0x244   :  { %v328_v52 = vsub.f32 0.0, %v290_v24 }
 0x245   :  { %v302_v30 = vsub.f32 %v298_v28, %v300_v27 }
 0x247   :  { %v304_v31 = vmax.f32 %v302_v30, 0.0 }
 0x249   :  { %v616_v32 = vpop.eup %615  ;;  %v306_v34 = vadd.f32 1e-05, %v304_v31 }
 0x24a   :  { %v308_v33 = vmul.f32 %v616_v32, %v305_v23  ;;  %vm314_vm7 = vweird.f32 %v616_v32 }
 0x24b   :  { %617 = vrsqrt.f32 %v306_v34  ;;  %vm315_vm9 = vmor %vm313_vm8, %vm314_vm7  ;;  %vm323_vm11 = vweird.f32 %v306_v34 }
 0x24c   :  { %v309_v35 = vmul.f32 %v616_v32, %v308_v33 }
 0x24e   :  { %v310_v36 = vmul.f32 0.5, %v309_v35 }
 0x250   :  { %v311_v37 = vsub.f32 1.5, %v310_v36 }
 0x251   :  { %v618_v38 = vpop.eup %617 }
 0x252   :  { %v312_v39 = vmul.f32 %v616_v32, %v311_v37  ;;  %v318_v41 = vmul.f32 %v618_v38, %v306_v34  ;;  %vm324_vm10 = vweird.f32 %v618_v38 }
 0x253   :  { %vm325_vm12 = vmor %vm323_vm11, %vm324_vm10 }
 0x254   :  { %v316_v42 = vsel %vm315_vm9, %v616_v32, %v312_v39  ;;  %v319_v43 = vmul.f32 %v618_v38, %v318_v41  ;;  %v474_v39 = vperm.slane %v845_v45, 4 }
 0x255   :  { %v329_v44 = vmul.f32 %v327_v40, %v316_v42  ;;  %v331_v46 = vmul.f32 %v316_v42, %v280_v4  ;;  %v513_v4 = vld [vmem:[#allocation5 + $0x8] sm:$0xf0]  ;;  %v477_v42 = vperm.slane %v845_v45, 5 }
 0x256   :  { %v320_v47 = vmul.f32 0.5, %v319_v43  ;;  %v516_v6 = vor.u32 %v583_v3, %v513_v4 }
 0x257   :  { %v333_v48 = vadd.f32 %v331_v46, %v329_v44 }
 0x258   :  { %v321_v50 = vsub.f32 1.5, %v320_v47  ;;  %139 = vmatpush.bf16.msra.mxu1 %v516_v6 }
 0x259   :  { %v336_v53 = vmul.f32 %v335_v49, %v333_v48 }
 0x25a   :  { %v322_v51 = vmul.f32 %v618_v38, %v321_v50 }
 0x25b   :  { %v339_v59 = vadd.f32 %v338_v54, %v336_v53  ;;  %518 = vmatmul.msk.bf16.vlgmr.msra.gmra.mxu1 %vm114_vm0, %v836_v5 }
 0x25c   :  { %v326_v55 = vsel %vm325_vm12, %v618_v38, %v322_v51 }
 0x25d   :  { %v330_v56 = vmul.f32 %v328_v52, %v326_v55  ;;  %v332_v57 = vmul.f32 %v326_v55, %v850_v7  ;;  %v341_v62 = vmul.f32 0.2, %v339_v59 }
 0x25f   :  { %v334_v58 = vadd.f32 %v332_v57, %v330_v56  ;;  %v343_v0 = vmax.f32 %v339_v59, %v341_v62 }
 0x261   :  { %v337_v60 = vmul.f32 %v335_v49, %v334_v58 }
 0x263   :  { %v340_v61 = vadd.f32 %v338_v54, %v337_v60 }
 0x265   :  { %v342_v63 = vmul.f32 0.2, %v340_v61 }
 0x267   :  { %v344_v1 = vmax.f32 %v340_v61, %v342_v63 }
 0x269   :  { %v345_v2 = vpack.c.bf16 %v344_v1, %v343_v0 }
 0x26b   :  { %418 = vmatmul.bf16.vlgmr.msra.gmra.mxu3 %v345_v2 }
 0x2d8   :  { %v141_v47 = vpop.f32.mrf.mxu1 }
 0x2e0   :  { %v143_v45 = vpop.f32.mrf.mxu1 }
 0x2ee   :  { %v419_v8 = vpop.f32.mrf.mxu3 }
 0x2ef   :  { %424 = vadd.xlane.f32.xlu2 %v419_v8  ;;  %v430_v7 = vmul.f32 %v419_v8, %v419_v8 }
 0x2f1   :  { %432 = vadd.xlane.f32.xlu1 %v430_v7 }
 0x2f6   :  { %v421_v9 = vpop.f32.mrf.mxu3 }
 0x2f7   :  { %426 = vadd.xlane.f32.xlu0 %v421_v9  ;;  %v431_v10 = vmul.f32 %v421_v9, %v421_v9 }
 0x2f9   :  { %434 = vadd.xlane.f32.xlu2 %v431_v10 }
 0x362   :  { %v425_v11 = vpop.xlane.xlu2 %424 }
 0x363   :  { %v428_v12 = vmul.f32 0.03125, %v425_v11 }
 0x364   :  { %v433_v13 = vpop.xlane.xlu1 %432 }
 0x365   :  { %v438_v14 = vmul.f32 %v428_v12, %v428_v12  ;;  %v436_v15 = vmul.f32 0.03125, %v433_v13  ;;  %v466_v33 = vsub.f32 0.0, %v428_v12 }
 0x367   :  { %v440_v16 = vsub.f32 %v436_v15, %v438_v14 }
 0x369   :  { %v442_v17 = vmax.f32 %v440_v16, 0.0 }
 0x36a   :  { %v427_v18 = vpop.xlane.xlu0 %426 }
 0x36b   :  { %v444_v19 = vadd.f32 1e-05, %v442_v17  ;;  %v429_v20 = vmul.f32 0.03125, %v427_v18 }
 0x36c   :  { %v435_v21 = vpop.xlane.xlu2 %434 }
 0x36d   :  { %619 = vrsqrt.f32 %v444_v19  ;;  %v439_v5 = vmul.f32 %v429_v20, %v429_v20  ;;  %v437_v22 = vmul.f32 0.03125, %v435_v21  ;;  %vm452_vm14 = vweird.f32 %v444_v19 }
 0x36e   :  { %v467_v49 = vsub.f32 0.0, %v429_v20 }
 0x36f   :  { %v441_v23 = vsub.f32 %v437_v22, %v439_v5 }
 0x371   :  { %v443_v24 = vmax.f32 %v441_v23, 0.0 }
 0x373   :  { %v620_v25 = vpop.eup %619  ;;  %v445_v27 = vadd.f32 1e-05, %v443_v24 }
 0x374   :  { %v447_v26 = vmul.f32 %v620_v25, %v444_v19  ;;  %vm453_vm13 = vweird.f32 %v620_v25 }
 0x375   :  { %621 = vrsqrt.f32 %v445_v27  ;;  %vm454_vm15 = vmor %vm452_vm14, %vm453_vm13  ;;  %vm462_vm1 = vweird.f32 %v445_v27 }
 0x376   :  { %v448_v28 = vmul.f32 %v620_v25, %v447_v26 }
 0x378   :  { %v449_v29 = vmul.f32 0.5, %v448_v28 }
 0x37a   :  { %v450_v30 = vsub.f32 1.5, %v449_v29 }
 0x37b   :  { %v622_v31 = vpop.eup %621 }
 0x37c   :  { %v451_v32 = vmul.f32 %v620_v25, %v450_v30  ;;  %v457_v34 = vmul.f32 %v622_v31, %v445_v27  ;;  %vm463_vm0 = vweird.f32 %v622_v31 }
 0x37d   :  { %vm464_vm2 = vmor %vm462_vm1, %vm463_vm0 }
 0x37e   :  { %v455_v35 = vsel %vm454_vm15, %v620_v25, %v451_v32  ;;  %v458_v36 = vmul.f32 %v622_v31, %v457_v34 }
 0x37f   :  { %v468_v37 = vmul.f32 %v466_v33, %v455_v35  ;;  %v470_v38 = vmul.f32 %v455_v35, %v419_v8 }
 0x380   :  { %v459_v40 = vmul.f32 0.5, %v458_v36 }
 0x381   :  { %v472_v41 = vadd.f32 %v470_v38, %v468_v37 }
 0x382   :  { %v460_v43 = vsub.f32 1.5, %v459_v40 }
 0x383   :  { %v475_v44 = vmul.f32 %v474_v39, %v472_v41 }
 0x384   :  { %v461_v46 = vmul.f32 %v622_v31, %v460_v43 }
 0x385   :  { %v478_v48 = vadd.f32 %v477_v42, %v475_v44 }
 0x386   :  { %v465_v51 = vsel %vm464_vm2, %v622_v31, %v461_v46 }
 0x387   :  { %v480_v50 = vadd.f32 %v478_v48, %v141_v47  ;;  %v469_v52 = vmul.f32 %v467_v49, %v465_v51  ;;  %v471_v53 = vmul.f32 %v465_v51, %v421_v9 }
 0x389   :  { %v482_v54 = vmul.f32 0.2, %v480_v50  ;;  %v473_v55 = vadd.f32 %v471_v53, %v469_v52 }
 0x38b   :  { %v484_v56 = vmax.f32 %v480_v50, %v482_v54  ;;  %v476_v57 = vmul.f32 %v474_v39, %v473_v55 }
 0x38d   :  { %486 = vst [vmem:[#allocation11] sm:$0xff] %v484_v56  ;;  %v479_v58 = vadd.f32 %v477_v42, %v476_v57 }
 0x38f   :  { %v481_v59 = vadd.f32 %v479_v58, %v143_v45 }
 0x391   :  { %v483_v60 = vmul.f32 0.2, %v481_v59 }
 0x393   :  { %v485_v61 = vmax.f32 %v481_v59, %v483_v60 }
 0x395   :  { %487 = vst [vmem:[#allocation11 + $0x8] sm:$0xff] %v485_v61 }
 0x396   :  { %500 = dma.vmem_to_hbm [thread:$0]  %s493_s4, 256, %s495_s21, [#allocation4], %s776_s23, %s776_s23, %s777_s24  }
 0x397   :  { %773 = dma.done.wait [#allocation4], 256  }
 0x398   :  { %774 = vsyncadd [#allocation4], 4294967040 }
 0x399   :  { %505 = vsyncpa [#allocation3], 1 }
 0x39a   :  { %506 = vsyncpa [#allocation6], 1 }
 0x39b   :  { %507 = vsyncpa [#allocation9], 1 }
 0x39c   :  { %508 = vsyncpa [#allocation4], 1 }

// kernel: tpu_custom_call.1
= control target key start
LH: loop header
LB: loop body
LE: loop exit
PB: predicated region body
PF: predicated region fallthrough
CT: control target
= control target key end

     0   :  { %10 = vsyncpa [#allocation3], 0  ;;  %s868_s0 = inlined_call_operand.hbm [shape: f32[16,16], index: 0, kind: input, shape index: {}]   ;;  %s869_s1 = inlined_call_operand.hbm [shape: bf16[16,256], index: 1, kind: input, shape index: {}]   ;;  %s870_s2 = inlined_call_operand.hbm [shape: bf16[128,128], index: 2, kind: input, shape index: {}]   ;;  %s871_s3 = inlined_call_operand.hbm [shape: bf16[128,128], index: 3, kind: input, shape index: {}]   ;;  %s872_s4 = inlined_call_operand.hbm [shape: f32[8,128], index: 4, kind: input, shape index: {}]   ;;  %s873_s5 = inlined_call_operand.hbm [shape: f32[16,128], index: 5, kind: output, shape index: {}]  }
   0x1   :  { %11 = vsyncpa [#allocation6], 0 }
   0x2   :  { %12 = vsyncpa [#allocation9], 0 }
   0x3   :  { %13 = vsyncpa [#allocation4], 0  ;;  %s31_s20 = sshll.u32 %s869_s1, 4  ;;  %s775_s21 = smov [#allocation5]   ;;  %s32_s20 = int_to_ptr.hbm [resolvable:$true] %s31_s20 }
   0x4   :  { %s33_s22 = sshll.u32 %s775_s21, 4  ;;  %s776_s23 = smov 128   ;;  %s34_s22 = int_to_ptr.vmem [resolvable:$true] %s33_s22 }
   0x5   :  { %s777_s24 = smov 8   ;;  %s57_s27 = sshll.u32 %s871_s3, 4  ;;  %s58_s27 = int_to_ptr.hbm [resolvable:$true] %s57_s27 }
   0x6   :  { %39 = dma.hbm_to_vmem [thread:$0]  %s32_s20, 256, %s34_s22, [#allocation6], %s776_s23, %s776_s23, %s777_s24  }
   0x7   :  { %s778_s28 = smov [#allocation8]   ;;  %s18_s1 = sshll.u32 %s868_s0, 4  ;;  %s19_s1 = int_to_ptr.hbm [resolvable:$true] %s18_s1 }
   0x8   :  { %s59_s29 = sshll.u32 %s778_s28, 4  ;;  %s779_s7 = smov 64   ;;  %s60_s29 = int_to_ptr.vmem [resolvable:$true] %s59_s29 }
   0x9   :  { %s780_s8 = smov 4   ;;  %s44_s11 = sshll.u32 %s870_s2, 4  ;;  %s45_s11 = int_to_ptr.hbm [resolvable:$true] %s44_s11 }
   0xa   :  { %65 = dma.hbm_to_vmem [thread:$0]  %s58_s27, 1024, %s60_s29, [#allocation9], %s779_s7, %s779_s7, %s780_s8  }
   0xb   :  { %s781_s12 = smov [#allocation2]   ;;  %s782_s3 = smov [#allocation7]  }
   0xc   :  { %s20_s13 = sshll.u32 %s781_s12, 4  ;;  %s46_s14 = sshll.u32 %s782_s3, 4  ;;  %s21_s13 = int_to_ptr.vmem [resolvable:$true] %s20_s13  ;;  %s47_s14 = int_to_ptr.vmem [resolvable:$true] %s46_s14 }
   0xd   :  { %26 = dma.hbm_to_vmem [thread:$0]  %s19_s1, 256, %s21_s13, [#allocation3], %s776_s23, %s776_s23, %s777_s24  }
   0xe   :  { %s71_s16 = sshll.u32 %s872_s4, 4  ;;  %s783_s17 = smov [#allocation10]   ;;  %s72_s16 = int_to_ptr.hbm [resolvable:$true] %s71_s16 }
   0xf   :  { %52 = dma.hbm_to_vmem [thread:$0]  %s45_s11, 1024, %s47_s14, [#allocation6], %s779_s7, %s779_s7, %s780_s8  }
  0x10   :  { %s73_s18 = sshll.u32 %s783_s17, 4  ;;  %s74_s18 = int_to_ptr.vmem [resolvable:$true] %s73_s18 }
  0x11   :  { %76 = dma.hbm_to_vmem [thread:$0]  %s72_s16, 128, %s74_s18, [#allocation9]  }
  0x12   :  { %767 = dma.done.wait [#allocation3], 256  }
  0x13   :  { %768 = vsyncadd [#allocation3], 4294967040 }
  0x14   :  { %769 = dma.done.wait [#allocation6], 1280  }
  0x15   :  { %770 = vsyncadd [#allocation6], 4294966016 }
  0x16   :  { %771 = dma.done.wait [#allocation9], 1152  }
  0x17   :  { %772 = vsyncadd [#allocation9], 4294966144  ;;  %v511_v0 = vld [vmem:[#allocation5] sm:$0xf]  ;;  %v584_v1 = vld [vmem:[#allocation5 + $0x4] sm:$0xf0] }
  0x18   :  { %v98_v2 = vld [vmem:[#allocation2] sm:$0xff]  ;;  %v512_v3 = vor.u32 %v584_v1, %v511_v0  ;;  %v99_v4 = vld [vmem:[#allocation2 + $0x8] sm:$0xff]  ;;  %vm114_vm0 = vcmask 130048   ;;  %v592_v10 = vld [vmem:[#allocation7 + $0x38] sm:$0xff]  ;;  %s784_s2 = smov [#allocation11]   ;;  %s494_s21 = sshll.u32 %s873_s5, 4  ;;  %s495_s21 = int_to_ptr.hbm [resolvable:$true] %s494_s21 }
  0x19   :  { %v836_v5 = vpack.c.bf16 %v99_v4, %v98_v2  ;;  %271 = vmatpush.bf16.msra.mxu2 %v592_v10  ;;  %v591_v11 = vld [vmem:[#allocation7 + $0x30] sm:$0xff]  ;;  %v590_v12 = vld [vmem:[#allocation7 + $0x28] sm:$0xff]  ;;  %v589_v13 = vld [vmem:[#allocation7 + $0x20] sm:$0xff]  ;;  %s492_s4 = sshll.u32 %s784_s2, 4  ;;  %s493_s4 = int_to_ptr.vmem [resolvable:$true] %s492_s4 }
  0x1a   :  { %125 = vmatpush.bf16.msra.mxu0 %v512_v3  ;;  %v588_v19 = vld [vmem:[#allocation7 + $0x18] sm:$0xff]  ;;  %v587_v21 = vld [vmem:[#allocation7 + $0x10] sm:$0xff]  ;;  %v586_v26 = vld [vmem:[#allocation7 + $0x8] sm:$0xff] }
  0x1b   :  { %v585_v30 = vld [vmem:[#allocation7] sm:$0xff]  ;;  %v599_v10 = vld [vmem:[#allocation8 + $0x30] sm:$0xff] }
  0x1c   :  { %v845_v45 = vld [vmem:[#allocation10] sm:$0xff] }
  0x1d   :  { %517 = vmatmul.msk.bf16.vlgmr.msra.gmra.mxu0 %vm114_vm0, %v836_v5  ;;  %272 = vmatpush.bf16.msra.mxu2 %v591_v11  ;;  %v196_v50 = vperm.slane %v845_v45, 0  ;;  %v199_v55 = vperm.slane %v845_v45, 1  ;;  %v598_v11 = vld [vmem:[#allocation8 + $0x28] sm:$0xff] }
  0x21   :  { %273 = vmatpush.bf16.msra.mxu2 %v590_v12  ;;  %v597_v12 = vld [vmem:[#allocation8 + $0x20] sm:$0xff] }
  0x25   :  { %274 = vmatpush.bf16.msra.mxu2 %v589_v13 }
  0x29   :  { %275 = vmatpush.bf16.msra.mxu2 %v588_v19 }
  0x2d   :  { %276 = vmatpush.bf16.msra.mxu2 %v587_v21 }
  0x31   :  { %277 = vmatpush.bf16.msra.mxu2 %v586_v26 }
  0x35   :  { %278 = vmatpush.bf16.msra.mxu2 %v585_v30 }
  0x9a   :  { %v127_v6 = vpop.f32.mrf.mxu0 }
  0x9b   :  { %146 = vadd.xlane.f32.xlu0 %v127_v6  ;;  %v152_v7 = vmul.f32 %v127_v6, %v127_v6 }
  0x9d   :  { %154 = vadd.xlane.f32.xlu1 %v152_v7 }
  0xa2   :  { %v840_v8 = vpop.f32.mrf.mxu0 }
  0xa3   :  { %148 = vadd.xlane.f32.xlu0 %v840_v8  ;;  %v153_v9 = vmul.f32 %v840_v8, %v840_v8 }
  0xa5   :  { %156 = vadd.xlane.f32.xlu1 %v153_v9  ;;  %v600_v9 = vld [vmem:[#allocation8 + $0x38] sm:$0xff] }
  0xa6   :  { %410 = vmatpush.bf16.msra.mxu3 %v600_v9 }
  0xaa   :  { %411 = vmatpush.bf16.msra.mxu3 %v599_v10 }
  0xae   :  { %412 = vmatpush.bf16.msra.mxu3 %v598_v11 }
  0xb2   :  { %413 = vmatpush.bf16.msra.mxu3 %v597_v12 }
 0x10e   :  { %v147_v14 = vpop.xlane.xlu0 %146 }
 0x10f   :  { %v150_v15 = vmul.f32 0.03125, %v147_v14 }
 0x110   :  { %v155_v16 = vpop.xlane.xlu1 %154 }
 0x111   :  { %v160_v17 = vmul.f32 %v150_v15, %v150_v15  ;;  %v158_v18 = vmul.f32 0.03125, %v155_v16  ;;  %v188_v41 = vsub.f32 0.0, %v150_v15 }
 0x113   :  { %v162_v20 = vsub.f32 %v158_v18, %v160_v17  ;;  %v596_v18 = vld [vmem:[#allocation8 + $0x18] sm:$0xff] }
 0x114   :  { %414 = vmatpush.bf16.msra.mxu3 %v596_v18 }
 0x115   :  { %v164_v22 = vmax.f32 %v162_v20, 0.0  ;;  %v595_v20 = vld [vmem:[#allocation8 + $0x10] sm:$0xff] }
 0x116   :  { %v149_v23 = vpop.xlane.xlu0 %148 }
 0x117   :  { %v166_v24 = vadd.f32 1e-05, %v164_v22  ;;  %v151_v25 = vmul.f32 0.03125, %v149_v23 }
 0x118   :  { %v157_v27 = vpop.xlane.xlu1 %156  ;;  %415 = vmatpush.bf16.msra.mxu3 %v595_v20 }
 0x119   :  { %611 = vrsqrt.f32 %v166_v24  ;;  %v161_v28 = vmul.f32 %v151_v25, %v151_v25  ;;  %v159_v29 = vmul.f32 0.03125, %v157_v27  ;;  %vm174_vm2 = vweird.f32 %v166_v24 }
 0x11a   :  { %v189_v53 = vsub.f32 0.0, %v151_v25  ;;  %v594_v25 = vld [vmem:[#allocation8 + $0x8] sm:$0xff] }
 0x11b   :  { %v163_v31 = vsub.f32 %v159_v29, %v161_v28  ;;  %v593_v29 = vld [vmem:[#allocation8] sm:$0xff] }
 0x11c   :  { %416 = vmatpush.bf16.msra.mxu3 %v594_v25 }
 0x11d   :  { %v165_v32 = vmax.f32 %v163_v31, 0.0 }
 0x11f   :  { %v612_v33 = vpop.eup %611  ;;  %v167_v35 = vadd.f32 1e-05, %v165_v32 }
 0x120   :  { %v169_v34 = vmul.f32 %v612_v33, %v166_v24  ;;  %vm175_vm1 = vweird.f32 %v612_v33  ;;  %417 = vmatpush.bf16.msra.mxu3 %v593_v29 }
 0x121   :  { %613 = vrsqrt.f32 %v167_v35  ;;  %vm176_vm3 = vmor %vm174_vm2, %vm175_vm1  ;;  %vm184_vm5 = vweird.f32 %v167_v35 }
 0x122   :  { %v170_v36 = vmul.f32 %v612_v33, %v169_v34 }
 0x124   :  { %v171_v37 = vmul.f32 0.5, %v170_v36 }
 0x126   :  { %v172_v38 = vsub.f32 1.5, %v171_v37 }
 0x127   :  { %v614_v39 = vpop.eup %613 }
 0x128   :  { %v173_v40 = vmul.f32 %v612_v33, %v172_v38  ;;  %v179_v42 = vmul.f32 %v614_v39, %v167_v35  ;;  %vm185_vm4 = vweird.f32 %v614_v39 }
 0x129   :  { %vm186_vm6 = vmor %vm184_vm5, %vm185_vm4 }
 0x12a   :  { %v177_v43 = vsel %vm176_vm3, %v612_v33, %v173_v40  ;;  %v180_v44 = vmul.f32 %v614_v39, %v179_v42 }
 0x12b   :  { %v190_v46 = vmul.f32 %v188_v41, %v177_v43  ;;  %v192_v47 = vmul.f32 %v177_v43, %v127_v6 }
 0x12c   :  { %v181_v48 = vmul.f32 0.5, %v180_v44 }
 0x12d   :  { %v194_v49 = vadd.f32 %v192_v47, %v190_v46 }
 0x12e   :  { %v182_v51 = vsub.f32 1.5, %v181_v48 }
 0x12f   :  { %v197_v54 = vmul.f32 %v196_v50, %v194_v49  ;;  %v335_v49 = vperm.slane %v845_v45, 2 }
 0x130   :  { %v183_v52 = vmul.f32 %v614_v39, %v182_v51 }
 0x131   :  { %v200_v60 = vadd.f32 %v199_v55, %v197_v54  ;;  %v338_v54 = vperm.slane %v845_v45, 3 }
 0x132   :  { %v187_v56 = vsel %vm186_vm6, %v614_v39, %v183_v52 }
 0x133   :  { %v191_v57 = vmul.f32 %v189_v53, %v187_v56  ;;  %v193_v58 = vmul.f32 %v187_v56, %v840_v8  ;;  %v202_v63 = vmul.f32 0.2, %v200_v60 }
 0x135   :  { %v195_v59 = vadd.f32 %v193_v58, %v191_v57  ;;  %v204_v1 = vmax.f32 %v200_v60, %v202_v63 }
 0x137   :  { %v198_v61 = vmul.f32 %v196_v50, %v195_v59 }
 0x139   :  { %v201_v62 = vadd.f32 %v199_v55, %v198_v61 }
 0x13b   :  { %v203_v0 = vmul.f32 0.2, %v201_v62 }
 0x13d   :  { %v205_v2 = vmax.f32 %v201_v62, %v203_v0 }
 0x13f   :  { %v206_v3 = vpack.c.bf16 %v205_v2, %v204_v1 }
 0x141   :  { %279 = vmatmul.bf16.vlgmr.msra.gmra.mxu2 %v206_v3  ;;  %v583_v3 = vld [vmem:[#allocation5 + $0x4] sm:$0xf] }
 0x1c4   :  { %v280_v4 = vpop.f32.mrf.mxu2 }
 0x1c5   :  { %285 = vadd.xlane.f32.xlu2 %v280_v4  ;;  %v291_v6 = vmul.f32 %v280_v4, %v280_v4 }
 0x1c7   :  { %293 = vadd.xlane.f32.xlu0 %v291_v6 }
 0x1cc   :  { %v850_v7 = vpop.f32.mrf.mxu2 }
 0x1cd   :  { %287 = vadd.xlane.f32.xlu2 %v850_v7  ;;  %v292_v8 = vmul.f32 %v850_v7, %v850_v7 }
 0x1cf   :  { %295 = vadd.xlane.f32.xlu1 %v292_v8 }
 0x238   :  { %v286_v13 = vpop.xlane.xlu2 %285 }
 0x239   :  { %v289_v14 = vmul.f32 0.03125, %v286_v13 }
 0x23a   :  { %v294_v15 = vpop.xlane.xlu0 %293 }
 0x23b   :  { %v299_v16 = vmul.f32 %v289_v14, %v289_v14  ;;  %v297_v17 = vmul.f32 0.03125, %v294_v15  ;;  %v327_v40 = vsub.f32 0.0, %v289_v14 }
 0x23d   :  { %v301_v19 = vsub.f32 %v297_v17, %v299_v16 }
 0x23f   :  { %v303_v21 = vmax.f32 %v301_v19, 0.0 }
 0x240   :  { %v288_v22 = vpop.xlane.xlu2 %287 }
 0x241   :  { %v305_v23 = vadd.f32 1e-05, %v303_v21  ;;  %v290_v24 = vmul.f32 0.03125, %v288_v22 }
 0x242   :  { %v296_v26 = vpop.xlane.xlu1 %295 }
 0x243   :  { %615 = vrsqrt.f32 %v305_v23  ;;  %v300_v27 = vmul.f32 %v290_v24, %v290_v24  ;;  %v298_v28 = vmul.f32 0.03125, %v296_v26  ;;  %vm313_vm8 = vweird.f32 %v305_v23 }
 0x244   :  { %v328_v52 = vsub.f32 0.0, %v290_v24 }
 0x245   :  { %v302_v30 = vsub.f32 %v298_v28, %v300_v27 }
 0x247   :  { %v304_v31 = vmax.f32 %v302_v30, 0.0 }
 0x249   :  { %v616_v32 = vpop.eup %615  ;;  %v306_v34 = vadd.f32 1e-05, %v304_v31 }
 0x24a   :  { %v308_v33 = vmul.f32 %v616_v32, %v305_v23  ;;  %vm314_vm7 = vweird.f32 %v616_v32 }
 0x24b   :  { %617 = vrsqrt.f32 %v306_v34  ;;  %vm315_vm9 = vmor %vm313_vm8, %vm314_vm7  ;;  %vm323_vm11 = vweird.f32 %v306_v34 }
 0x24c   :  { %v309_v35 = vmul.f32 %v616_v32, %v308_v33 }
 0x24e   :  { %v310_v36 = vmul.f32 0.5, %v309_v35 }
 0x250   :  { %v311_v37 = vsub.f32 1.5, %v310_v36 }
 0x251   :  { %v618_v38 = vpop.eup %617 }
 0x252   :  { %v312_v39 = vmul.f32 %v616_v32, %v311_v37  ;;  %v318_v41 = vmul.f32 %v618_v38, %v306_v34  ;;  %vm324_vm10 = vweird.f32 %v618_v38 }
 0x253   :  { %vm325_vm12 = vmor %vm323_vm11, %vm324_vm10 }
 0x254   :  { %v316_v42 = vsel %vm315_vm9, %v616_v32, %v312_v39  ;;  %v319_v43 = vmul.f32 %v618_v38, %v318_v41  ;;  %v474_v39 = vperm.slane %v845_v45, 4 }
 0x255   :  { %v329_v44 = vmul.f32 %v327_v40, %v316_v42  ;;  %v331_v46 = vmul.f32 %v316_v42, %v280_v4  ;;  %v513_v4 = vld [vmem:[#allocation5 + $0x8] sm:$0xf0]  ;;  %v477_v42 = vperm.slane %v845_v45, 5 }
 0x256   :  { %v320_v47 = vmul.f32 0.5, %v319_v43  ;;  %v516_v6 = vor.u32 %v583_v3, %v513_v4 }
 0x257   :  { %v333_v48 = vadd.f32 %v331_v46, %v329_v44 }
 0x258   :  { %v321_v50 = vsub.f32 1.5, %v320_v47  ;;  %139 = vmatpush.bf16.msra.mxu1 %v516_v6 }
 0x259   :  { %v336_v53 = vmul.f32 %v335_v49, %v333_v48 }
 0x25a   :  { %v322_v51 = vmul.f32 %v618_v38, %v321_v50 }
 0x25b   :  { %v339_v59 = vadd.f32 %v338_v54, %v336_v53  ;;  %518 = vmatmul.msk.bf16.vlgmr.msra.gmra.mxu1 %vm114_vm0, %v836_v5 }
 0x25c   :  { %v326_v55 = vsel %vm325_vm12, %v618_v38, %v322_v51 }
 0x25d   :  { %v330_v56 = vmul.f32 %v328_v52, %v326_v55  ;;  %v332_v57 = vmul.f32 %v326_v55, %v850_v7  ;;  %v341_v62 = vmul.f32 0.2, %v339_v59 }
 0x25f   :  { %v334_v58 = vadd.f32 %v332_v57, %v330_v56  ;;  %v343_v0 = vmax.f32 %v339_v59, %v341_v62 }
 0x261   :  { %v337_v60 = vmul.f32 %v335_v49, %v334_v58 }
 0x263   :  { %v340_v61 = vadd.f32 %v338_v54, %v337_v60 }
 0x265   :  { %v342_v63 = vmul.f32 0.2, %v340_v61 }
 0x267   :  { %v344_v1 = vmax.f32 %v340_v61, %v342_v63 }
 0x269   :  { %v345_v2 = vpack.c.bf16 %v344_v1, %v343_v0 }
 0x26b   :  { %418 = vmatmul.bf16.vlgmr.msra.gmra.mxu3 %v345_v2 }
 0x2d8   :  { %v141_v47 = vpop.f32.mrf.mxu1 }
 0x2e0   :  { %v143_v45 = vpop.f32.mrf.mxu1 }
 0x2ee   :  { %v419_v8 = vpop.f32.mrf.mxu3 }
 0x2ef   :  { %424 = vadd.xlane.f32.xlu2 %v419_v8  ;;  %v430_v7 = vmul.f32 %v419_v8, %v419_v8 }
 0x2f1   :  { %432 = vadd.xlane.f32.xlu1 %v430_v7 }
 0x2f6   :  { %v421_v9 = vpop.f32.mrf.mxu3 }
 0x2f7   :  { %426 = vadd.xlane.f32.xlu0 %v421_v9  ;;  %v431_v10 = vmul.f32 %v421_v9, %v421_v9 }
 0x2f9   :  { %434 = vadd.xlane.f32.xlu2 %v431_v10 }
 0x362   :  { %v425_v11 = vpop.xlane.xlu2 %424 }
 0x363   :  { %v428_v12 = vmul.f32 0.03125, %v425_v11 }
 0x364   :  { %v433_v13 = vpop.xlane.xlu1 %432 }
 0x365   :  { %v438_v14 = vmul.f32 %v428_v12, %v428_v12  ;;  %v436_v15 = vmul.f32 0.03125, %v433_v13  ;;  %v466_v33 = vsub.f32 0.0, %v428_v12 }
 0x367   :  { %v440_v16 = vsub.f32 %v436_v15, %v438_v14 }
 0x369   :  { %v442_v17 = vmax.f32 %v440_v16, 0.0 }
 0x36a   :  { %v427_v18 = vpop.xlane.xlu0 %426 }
 0x36b   :  { %v444_v19 = vadd.f32 1e-05, %v442_v17  ;;  %v429_v20 = vmul.f32 0.03125, %v427_v18 }
 0x36c   :  { %v435_v21 = vpop.xlane.xlu2 %434 }
 0x36d   :  { %619 = vrsqrt.f32 %v444_v19  ;;  %v439_v5 = vmul.f32 %v429_v20, %v429_v20  ;;  %v437_v22 = vmul.f32 0.03125, %v435_v21  ;;  %vm452_vm14 = vweird.f32 %v444_v19 }
 0x36e   :  { %v467_v49 = vsub.f32 0.0, %v429_v20 }
 0x36f   :  { %v441_v23 = vsub.f32 %v437_v22, %v439_v5 }
 0x371   :  { %v443_v24 = vmax.f32 %v441_v23, 0.0 }
 0x373   :  { %v620_v25 = vpop.eup %619  ;;  %v445_v27 = vadd.f32 1e-05, %v443_v24 }
 0x374   :  { %v447_v26 = vmul.f32 %v620_v25, %v444_v19  ;;  %vm453_vm13 = vweird.f32 %v620_v25 }
 0x375   :  { %621 = vrsqrt.f32 %v445_v27  ;;  %vm454_vm15 = vmor %vm452_vm14, %vm453_vm13  ;;  %vm462_vm1 = vweird.f32 %v445_v27 }
 0x376   :  { %v448_v28 = vmul.f32 %v620_v25, %v447_v26 }
 0x378   :  { %v449_v29 = vmul.f32 0.5, %v448_v28 }
 0x37a   :  { %v450_v30 = vsub.f32 1.5, %v449_v29 }
 0x37b   :  { %v622_v31 = vpop.eup %621 }
 0x37c   :  { %v451_v32 = vmul.f32 %v620_v25, %v450_v30  ;;  %v457_v34 = vmul.f32 %v622_v31, %v445_v27  ;;  %vm463_vm0 = vweird.f32 %v622_v31 }
 0x37d   :  { %vm464_vm2 = vmor %vm462_vm1, %vm463_vm0 }
 0x37e   :  { %v455_v35 = vsel %vm454_vm15, %v620_v25, %v451_v32  ;;  %v458_v36 = vmul.f32 %v622_v31, %v457_v34 }
 0x37f   :  { %v468_v37 = vmul.f32 %v466_v33, %v455_v35  ;;  %v470_v38 = vmul.f32 %v455_v35, %v419_v8 }
 0x380   :  { %v459_v40 = vmul.f32 0.5, %v458_v36 }
 0x381   :  { %v472_v41 = vadd.f32 %v470_v38, %v468_v37 }
 0x382   :  { %v460_v43 = vsub.f32 1.5, %v459_v40 }
 0x383   :  { %v475_v44 = vmul.f32 %v474_v39, %v472_v41 }
 0x384   :  { %v461_v46 = vmul.f32 %v622_v31, %v460_v43 }
 0x385   :  { %v478_v48 = vadd.f32 %v477_v42, %v475_v44 }
 0x386   :  { %v465_v51 = vsel %vm464_vm2, %v622_v31, %v461_v46 }
 0x387   :  { %v480_v50 = vadd.f32 %v478_v48, %v141_v47  ;;  %v469_v52 = vmul.f32 %v467_v49, %v465_v51  ;;  %v471_v53 = vmul.f32 %v465_v51, %v421_v9 }
 0x389   :  { %v482_v54 = vmul.f32 0.2, %v480_v50  ;;  %v473_v55 = vadd.f32 %v471_v53, %v469_v52 }
 0x38b   :  { %v484_v56 = vmax.f32 %v480_v50, %v482_v54  ;;  %v476_v57 = vmul.f32 %v474_v39, %v473_v55 }
 0x38d   :  { %486 = vst [vmem:[#allocation11] sm:$0xff] %v484_v56  ;;  %v479_v58 = vadd.f32 %v477_v42, %v476_v57 }
 0x38f   :  { %v481_v59 = vadd.f32 %v479_v58, %v143_v45 }
 0x391   :  { %v483_v60 = vmul.f32 0.2, %v481_v59 }
 0x393   :  { %v485_v61 = vmax.f32 %v481_v59, %v483_v60 }
 0x395   :  { %487 = vst [vmem:[#allocation11 + $0x8] sm:$0xff] %v485_v61 }
 0x396   :  { %500 = dma.vmem_to_hbm [thread:$0]  %s493_s4, 256, %s495_s21, [#allocation4], %s776_s23, %s776_s23, %s777_s24  }
 0x397   :  { %773 = dma.done.wait [#allocation4], 256  }
 0x398   :  { %774 = vsyncadd [#allocation4], 4294967040 }
 0x399   :  { %505 = vsyncpa [#allocation3], 1 }
 0x39a   :  { %506 = vsyncpa [#allocation6], 1 }
 0x39b   :  { %507 = vsyncpa [#allocation9], 1 }
 0x39c   :  { %508 = vsyncpa [#allocation4], 1 }

</bundles_post_ra>
